<compile_context>
chip_gen: v7x
topology: tpu7x:2x2x1
jax: 0.10.0
libtpu: 0.0.40
codegen_flags: <defaults>
</compile_context>

<pallas_src>
import functools

import jax
import jax.numpy as jnp
from jax import lax
from jax.experimental import pallas as pl
from jax.experimental.pallas import tpu as pltpu


# ------------------------------ small helpers ------------------------------

def _round_up(n, m):
    return (n + m - 1) // m * m


def _sum_all(a):
    """Full reduce of a 2-D tile to a (1, 1) tile (no scalar extraction)."""
    return jnp.sum(jnp.sum(a, axis=1, keepdims=True), axis=0, keepdims=True)


def _pick_batch_tile(B):
    for tb in (256, 128, 64, 32, 16, 8):
        if B % tb == 0:
            return tb
    return B  # block equals the full dim, always legal


def _nan_to_num0(loss):
    big = jnp.float32(jnp.finfo(jnp.float32).max)
    loss = jnp.where(jnp.isnan(loss), jnp.float32(0.0), loss)
    return jnp.clip(loss, -big, big)


# ------------------------- resident (gridless) kernel ------------------------
# Whole (B, Dp) arrays live in VMEM; the Gram is computed on the SMALLER axis.

def _make_resident_kernel(*, B, D, Dp, sim_coeff, std_coeff, cov_coeff,
                          use_bf16_mxu):
    inv_bd = 1.0 / (B * D)
    inv_b = 1.0 / B
    inv_d = 1.0 / D
    inv_bm1 = 1.0 / max(B - 1, 1)

    def kernel(x_ref, y_ref, loss_ref):
        # in-kernel dtype cast (inputs may be bf16 / native backbone dtype)
        x = x_ref[...].astype(jnp.float32)
        y = y_ref[...].astype(jnp.float32)

        # --- representation (MSE) loss ------------------------------------
        diff = x - y
        repr_loss = _sum_all(diff * diff) * inv_bd                     # (1,1)

        # --- center over the batch -----------------------------------------
        mu_x = jnp.sum(x, axis=0, keepdims=True) * inv_b               # (1,Dp)
        mu_y = jnp.sum(y, axis=0, keepdims=True) * inv_b
        xc = x - mu_x
        yc = y - mu_y

        # centered per-feature sum of squares == diag(xc^T xc)
        cssq_x = jnp.sum(xc * xc, axis=0, keepdims=True)               # (1,Dp)
        cssq_y = jnp.sum(yc * yc, axis=0, keepdims=True)

        # --- std (variance hinge) loss, masked over padded lanes -----------
        lane = lax.broadcasted_iota(jnp.int32, (1, Dp), 1)
        lane_mask = lane < D
        std_x = jnp.sqrt(cssq_x * inv_bm1 + 1e-4)
        std_y = jnp.sqrt(cssq_y * inv_bm1 + 1e-4)
        hx = jnp.where(lane_mask, jnp.maximum(1.0 - std_x, 0.0), 0.0)
        hy = jnp.where(lane_mask, jnp.maximum(1.0 - std_y, 0.0), 0.0)
        std_loss = 0.5 * (jnp.sum(hx, axis=1, keepdims=True)
                          + jnp.sum(hy, axis=1, keepdims=True)) * inv_d

        # --- covariance loss: materialize only the SMALLER Gram -------------
        if use_bf16_mxu:
            xg = xc.astype(jnp.bfloat16)
            yg = yc.astype(jnp.bfloat16)
        else:
            xg, yg = xc, yc
        if B <= Dp:
            dn = (((1,), (1,)), ((), ()))   # contract features -> (B, B)
        else:
            dn = (((0,), (0,)), ((), ()))   # contract batch    -> (Dp, Dp)
        gx = lax.dot_general(xg, xg, dn, preferred_element_type=jnp.float32)
        gy = lax.dot_general(yg, yg, dn, preferred_element_type=jnp.float32)

        # off_diag(cov)^2.sum() == (||G_c||_F^2 - sum(diag^2)) / (B-1)^2
        off_x = jnp.maximum(
            _sum_all(gx * gx) - jnp.sum(cssq_x * cssq_x, axis=1, keepdims=True),
            0.0)
        off_y = jnp.maximum(
            _sum_all(gy * gy) - jnp.sum(cssq_y * cssq_y, axis=1, keepdims=True),
            0.0)
        cov_loss = (off_x + off_y) * (inv_bm1 * inv_bm1 * inv_d)

        loss = sim_coeff * repr_loss + std_coeff * std_loss + cov_coeff * cov_loss
        loss_ref[...] = _nan_to_num0(loss)

    return kernel


# --------------------- batch-tiled sufficient-stats kernel -------------------
# Grid over batch tiles ("arbitrary"); VMEM scratch accumulates sufficient
# statistics; centering folded in at the last grid step.

def _make_tiled_kernel(*, B, D, Dp, sim_coeff, std_coeff, cov_coeff,
                       use_bf16_mxu):
    inv_bd = 1.0 / (B * D)
    inv_b = 1.0 / B
    inv_d = 1.0 / D
    inv_bm1 = 1.0 / max(B - 1, 1)
    fB = float(B)

    def kernel(x_ref, y_ref, loss_ref,
               sum_x, sum_y, ssq_x, ssq_y, gram_x, gram_y, sqdiff):
        step = pl.program_id(0)

        @pl.when(step == 0)
        def _init():
            sum_x[...] = jnp.zeros_like(sum_x)
            sum_y[...] = jnp.zeros_like(sum_y)
            ssq_x[...] = jnp.zeros_like(ssq_x)
            ssq_y[...] = jnp.zeros_like(ssq_y)
            gram_x[...] = jnp.zeros_like(gram_x)
            gram_y[...] = jnp.zeros_like(gram_y)
            sqdiff[...] = jnp.zeros_like(sqdiff)

        x_t = x_ref[...]
        y_t = y_ref[...]
        x32 = x_t.astype(jnp.float32)     # in-kernel cast (VPU filler, free)
        y32 = y_t.astype(jnp.float32)

        d = x32 - y32
        sqdiff[...] += _sum_all(d * d)

        sum_x[...] += jnp.sum(x32, axis=0, keepdims=True)
        sum_y[...] += jnp.sum(y32, axis=0, keepdims=True)
        ssq_x[...] += jnp.sum(x32 * x32, axis=0, keepdims=True)
        ssq_y[...] += jnp.sum(y32 * y32, axis=0, keepdims=True)

        if use_bf16_mxu:
            xm = x_t.astype(jnp.bfloat16)
            ym = y_t.astype(jnp.bfloat16)
        else:
            xm, ym = x32, y32
        dn = (((0,), (0,)), ((), ()))     # contract batch-tile axis -> (Dp, Dp)
        gram_x[...] += lax.dot_general(xm, xm, dn,
                                       preferred_element_type=jnp.float32)
        gram_y[...] += lax.dot_general(ym, ym, dn,
                                       preferred_element_type=jnp.float32)

        @pl.when(step == pl.num_programs(0) - 1)
        def _finalize():
            repr_loss = sqdiff[...] * inv_bd

            mu_x = sum_x[...] * inv_b                                  # (1,Dp)
            mu_y = sum_y[...] * inv_b
            # centered per-feature sum of squares (clamped for fp safety)
            cssq_x = jnp.maximum(ssq_x[...] - fB * mu_x * mu_x, 0.0)
            cssq_y = jnp.maximum(ssq_y[...] - fB * mu_y * mu_y, 0.0)

            lane = lax.broadcasted_iota(jnp.int32, (1, Dp), 1)
            lane_mask = lane < D
            std_x = jnp.sqrt(cssq_x * inv_bm1 + 1e-4)
            std_y = jnp.sqrt(cssq_y * inv_bm1 + 1e-4)
            hx = jnp.where(lane_mask, jnp.maximum(1.0 - std_x, 0.0), 0.0)
            hy = jnp.where(lane_mask, jnp.maximum(1.0 - std_y, 0.0), 0.0)
            std_loss = 0.5 * (jnp.sum(hx, axis=1, keepdims=True)
                              + jnp.sum(hy, axis=1, keepdims=True)) * inv_d

            # ||G_c||_F^2 with G_c = G_raw - B*mu*mu^T, without materializing
            # the outer product:
            #   ||G_c||^2 = ||G||^2 - 2B*(mu G mu^T) + B^2*(mu.mu)^2
            dn_mv = (((1,), (0,)), ((), ()))
            gxx = gram_x[...]
            gyy = gram_y[...]
            g2_x = _sum_all(gxx * gxx)
            g2_y = _sum_all(gyy * gyy)
            vx = lax.dot_general(mu_x, gxx, dn_mv,
                                 preferred_element_type=jnp.float32)  # (1,Dp)
            vy = lax.dot_general(mu_y, gyy, dn_mv,
                                 preferred_element_type=jnp.float32)
            qx = jnp.sum(vx * mu_x, axis=1, keepdims=True)            # mu G mu^T
            qy = jnp.sum(vy * mu_y, axis=1, keepdims=True)
            m2x = jnp.sum(mu_x * mu_x, axis=1, keepdims=True)
            m2y = jnp.sum(mu_y * mu_y, axis=1, keepdims=True)
            frob_x = g2_x - 2.0 * fB * qx + fB * fB * m2x * m2x
            frob_y = g2_y - 2.0 * fB * qy + fB * fB * m2y * m2y

            off_x = jnp.maximum(
                frob_x - jnp.sum(cssq_x * cssq_x, axis=1, keepdims=True), 0.0)
            off_y = jnp.maximum(
                frob_y - jnp.sum(cssq_y * cssq_y, axis=1, keepdims=True), 0.0)
            cov_loss = (off_x + off_y) * (inv_bm1 * inv_bm1 * inv_d)

            loss = (sim_coeff * repr_loss + std_coeff * std_loss
                    + cov_coeff * cov_loss)
            loss_ref[...] = _nan_to_num0(loss)

    return kernel


# --------------------------------- wrappers ---------------------------------

def vicreg_loss(lc_feat, lc_pred, sim_coeff, std_coeff, cov_coeff,
                *, use_bf16_mxu=False, batch_tile=None, force_path=None):
    """Fused Pallas VICReg loss. Returns a scalar (float32)."""
    assert lc_feat.ndim == 2 and lc_feat.shape == lc_pred.shape
    B, D = lc_feat.shape
    Dp = _round_up(D, 128)

    x, y = lc_feat, lc_pred
    if Dp != D:
        # Lane-dense layout: zero-pad the feature axis to a multiple of 128.
        # Padded lanes contribute nothing to MSE/mean/cov and are masked out of
        # the std hinge in-kernel; all normalizers use the true D.
        x = jnp.pad(x, ((0, 0), (0, Dp - D)))
        y = jnp.pad(y, ((0, 0), (0, Dp - D)))

    path = force_path
    if path is None:
        # Small batches stay fully resident (smaller (B,B) Gram); large batches
        # stream over a batch grid with sufficient-statistic accumulators.
        path = "resident" if B <= 512 else "tiled"

    itemsize = jnp.dtype(x.dtype).itemsize
    kern_kwargs = dict(B=B, D=D, Dp=Dp, sim_coeff=float(sim_coeff),
                       std_coeff=float(std_coeff), cov_coeff=float(cov_coeff),
                       use_bf16_mxu=use_bf16_mxu)

    if path == "resident":
        kern = _make_resident_kernel(**kern_kwargs)
        gram_n = min(B, Dp)
        need = 2 * B * Dp * max(itemsize, 4) + 2 * gram_n * gram_n * 4
        vmem_limit = int(min(max(2 * need + (4 << 20), 16 << 20), 64 << 20))
        loss = pl.pallas_call(
            kern,
            out_shape=jax.ShapeDtypeStruct((1, 1), jnp.float32),
            in_specs=[pl.BlockSpec(memory_space=pltpu.MemorySpace.VMEM)] * 2,
            out_specs=pl.BlockSpec(memory_space=pltpu.MemorySpace.VMEM),
            compiler_params=pltpu.CompilerParams(vmem_limit_bytes=vmem_limit),
        )(x, y)
    else:
        tb = batch_tile if batch_tile is not None else _pick_batch_tile(B)
        assert B % tb == 0, (B, tb)
        nb = B // tb
        kern = _make_tiled_kernel(**kern_kwargs)
        need = (2 * 2 * tb * Dp * itemsize        # double-buffered x/y tiles
                + 2 * Dp * Dp * 4                 # Gram accumulators
                + 4 * Dp * 4 + 64)                # per-feature sums + scalars
        vmem_limit = int(min(max(2 * need + (4 << 20), 16 << 20), 64 << 20))
        loss = pl.pallas_call(
            kern,
            out_shape=jax.ShapeDtypeStruct((1, 1), jnp.float32),
            grid_spec=pltpu.PrefetchScalarGridSpec(
                num_scalar_prefetch=0,
                grid=(nb,),
                in_specs=[pl.BlockSpec((tb, Dp), lambda i: (i, 0)),
                          pl.BlockSpec((tb, Dp), lambda i: (i, 0))],
                out_specs=pl.BlockSpec((1, 1), lambda i: (0, 0)),
                scratch_shapes=[pltpu.VMEM((1, Dp), jnp.float32)] * 4
                               + [pltpu.VMEM((Dp, Dp), jnp.float32)] * 2
                               + [pltpu.VMEM((1, 1), jnp.float32)],
            ),
            compiler_params=pltpu.CompilerParams(
                dimension_semantics=("arbitrary",),
                vmem_limit_bytes=vmem_limit),
        )(x, y)
    return loss[0, 0]


def prepare_predictor_input(spectra_feat, latent=None):
    """Mirror of: latent.nan_to_num(0); spectra_feat = cat((spectra_feat, latent), 1).
    Done wrapper-side so no lane-axis concat ever enters a kernel."""
    if latent is None:
        return spectra_feat
    latent = jnp.nan_to_num(latent, nan=0.0)
    return jnp.concatenate([spectra_feat, latent], axis=1)


def multimodal_jepa_forward(lc_feat, lc_pred, loss_args, **vicreg_kwargs):
    """MultiModalJEPA.forward downstream of the external backbones/predictor."""
    loss = vicreg_loss(
        lc_feat, lc_pred,
        loss_args["sim_coeff"], loss_args["std_coeff"], loss_args["cov_coeff"],
        **vicreg_kwargs,
    )
    return {"loss": loss, "q": lc_pred}


# ------------------------- pure-JAX reference check ------------------------

def reference_vicreg_loss(x, y, sim_coeff, std_coeff, cov_coeff):
    B, D = x.shape
    repr_loss = jnp.mean((x - y) ** 2)
    xc = x - x.mean(axis=0)
    yc = y - y.mean(axis=0)
    std_x = jnp.sqrt(jnp.var(xc, axis=0, ddof=1) + 1e-4)
    std_y = jnp.sqrt(jnp.var(yc, axis=0, ddof=1) + 1e-4)
    std_loss = (jnp.mean(jnp.maximum(1.0 - std_x, 0.0)) / 2
                + jnp.mean(jnp.maximum(1.0 - std_y, 0.0)) / 2)
    cov_x = jnp.matmul(xc.T, xc, precision=lax.Precision.HIGHEST) / (B - 1)
    cov_y = jnp.matmul(yc.T, yc, precision=lax.Precision.HIGHEST) / (B - 1)
    offdiag = lambda m: m - jnp.diag(jnp.diag(m))
    cov_loss = (offdiag(cov_x) ** 2).sum() / D + (offdiag(cov_y) ** 2).sum() / D
    loss = sim_coeff * repr_loss + std_coeff * std_loss + cov_coeff * cov_loss
    return jnp.nan_to_num(loss, nan=0.0)


# ----------------------------------- main -----------------------------------

if __name__ == "__main__":
    B = 16    # batch
    D = 32    # backbone / predictor embedding dim (padded to 128 lane-dense)
    L = 16    # optional latent dim

    key = jax.random.PRNGKey(0)
    k1, k2, k3, k4 = jax.random.split(key, 4)

    # Outputs of the (external, undefined) backbones.
    lc_feat = jax.random.normal(k1, (B, D), jnp.float32)
    spectra_feat = jax.random.normal(k2, (B, D), jnp.float32)

    # Optional latent path (exercise nan_to_num + wrapper-side concat).
    latent = jax.random.normal(k3, (B, L), jnp.float32)
    latent = latent.at[0, 0].set(jnp.nan)
    pred_in = prepare_predictor_input(spectra_feat, latent)     # (B, D + L)
    assert pred_in.shape == (B, D + L)
    assert not bool(jnp.any(jnp.isnan(pred_in)))

    # Output of the (external, undefined) vicreg_predictor Transformer.
    lc_pred = jax.random.normal(k4, (B, D), jnp.float32)

    loss_args = dict(sim_coeff=25.0, std_coeff=25.0, cov_coeff=1.0)
    ref_loss = reference_vicreg_loss(lc_feat, lc_pred, **loss_args)

    # 1) Default forward: resident path, (B,B) Gram (B <= Dp), f32.
    out = multimodal_jepa_forward(lc_feat, lc_pred, loss_args)
    jax.block_until_ready(out)
    assert out["q"].shape == (B, D)
    assert jnp.allclose(out["loss"], ref_loss, rtol=2e-3, atol=2e-3), (
        float(out["loss"]), float(ref_loss))

    # 2) Batch-tiled sufficient-statistics path (2 grid steps), f32.
    loss_tiled = vicreg_loss(lc_feat, lc_pred, **loss_args,
                             force_path="tiled", batch_tile=8)
    jax.block_until_ready(loss_tiled)
    assert jnp.allclose(loss_tiled, ref_loss, rtol=2e-3, atol=2e-3), (
        float(loss_tiled), float(ref_loss))

    # 3) bf16 inputs + bf16 MXU Gram (v6e/v7x-native), in-kernel f32 accumulate.
    lc_feat_bf = lc_feat.astype(jnp.bfloat16)
    lc_pred_bf = lc_pred.astype(jnp.bfloat16)
    ref_bf = reference_vicreg_loss(lc_feat_bf.astype(jnp.float32),
                                   lc_pred_bf.astype(jnp.float32), **loss_args)
    loss_bf = vicreg_loss(lc_feat_bf, lc_pred_bf, **loss_args,
                          use_bf16_mxu=True, force_path="tiled")
    jax.block_until_ready(loss_bf)
    assert jnp.allclose(loss_bf, ref_bf, rtol=5e-2, atol=5e-2), (
        float(loss_bf), float(ref_bf))

    print("KERNEL_OK")
</pallas_src>

<mosaic_0001>
module attributes {stable_mosaic.version = 11 : i64} {
  func.func @kernel(%arg0: memref<16x128xf32, #tpu.memory_space<vmem>>, %arg1: memref<16x128xf32, #tpu.memory_space<vmem>>, %arg2: memref<1x1xf32, #tpu.memory_space<vmem>>) attributes {dimension_semantics = [], scalar_prefetch = 0 : i64, scratch_operands = 0 : i64, tpu.core_type = #tpu.core_type<tc>} {
    %c0 = arith.constant 0 : index
    %c0_0 = arith.constant 0 : index
    %0 = vector.load %arg0[%c0, %c0_0] : memref<16x128xf32, #tpu.memory_space<vmem>>, vector<16x128xf32>
    %c0_1 = arith.constant 0 : index
    %c0_2 = arith.constant 0 : index
    %1 = vector.load %arg1[%c0_1, %c0_2] : memref<16x128xf32, #tpu.memory_space<vmem>>, vector<16x128xf32>
    %2 = arith.subf %0, %1 : vector<16x128xf32>
    %3 = arith.mulf %2, %2 : vector<16x128xf32>
    %cst = arith.constant dense<0.000000e+00> : vector<16xf32>
    %4 = vector.multi_reduction <add>, %3, %cst [1] : vector<16x128xf32> to vector<16xf32>
    %5 = vector.shape_cast %4 : vector<16xf32> to vector<16x1xf32>
    %cst_3 = arith.constant dense<0.000000e+00> : vector<1xf32>
    %6 = vector.multi_reduction <add>, %5, %cst_3 [0] : vector<16x1xf32> to vector<1xf32>
    %7 = vector.shape_cast %6 : vector<1xf32> to vector<1x1xf32>
    %cst_4 = arith.constant 0.001953125 : f32
    %8 = vector.broadcast %cst_4 : f32 to vector<1x1xf32>
    %9 = arith.mulf %7, %8 : vector<1x1xf32>
    %cst_5 = arith.constant dense<0.000000e+00> : vector<128xf32>
    %10 = vector.multi_reduction <add>, %0, %cst_5 [0] : vector<16x128xf32> to vector<128xf32>
    %11 = vector.shape_cast %10 : vector<128xf32> to vector<1x128xf32>
    %cst_6 = arith.constant 6.250000e-02 : f32
    %12 = vector.broadcast %cst_6 : f32 to vector<1x128xf32>
    %13 = arith.mulf %11, %12 : vector<1x128xf32>
    %cst_7 = arith.constant dense<0.000000e+00> : vector<128xf32>
    %14 = vector.multi_reduction <add>, %1, %cst_7 [0] : vector<16x128xf32> to vector<128xf32>
    %15 = vector.shape_cast %14 : vector<128xf32> to vector<1x128xf32>
    %cst_8 = arith.constant 6.250000e-02 : f32
    %16 = vector.broadcast %cst_8 : f32 to vector<1x128xf32>
    %17 = arith.mulf %15, %16 : vector<1x128xf32>
    %18 = vector.broadcast %13 : vector<1x128xf32> to vector<16x128xf32>
    %19 = arith.subf %0, %18 : vector<16x128xf32>
    %20 = vector.broadcast %17 : vector<1x128xf32> to vector<16x128xf32>
    %21 = arith.subf %1, %20 : vector<16x128xf32>
    %22 = arith.mulf %19, %19 : vector<16x128xf32>
    %cst_9 = arith.constant dense<0.000000e+00> : vector<128xf32>
    %23 = vector.multi_reduction <add>, %22, %cst_9 [0] : vector<16x128xf32> to vector<128xf32>
    %24 = vector.shape_cast %23 : vector<128xf32> to vector<1x128xf32>
    %25 = arith.mulf %21, %21 : vector<16x128xf32>
    %cst_10 = arith.constant dense<0.000000e+00> : vector<128xf32>
    %26 = vector.multi_reduction <add>, %25, %cst_10 [0] : vector<16x128xf32> to vector<128xf32>
    %27 = vector.shape_cast %26 : vector<128xf32> to vector<1x128xf32>
    %28 = tpu.iota {dimensions = array<i32: 1>} : vector<1x128xi32>
    %c32_i32 = arith.constant 32 : i32
    %29 = vector.broadcast %c32_i32 : i32 to vector<1x128xi32>
    %30 = arith.cmpi slt, %28, %29 : vector<1x128xi32>
    %cst_11 = arith.constant 0.0666666701 : f32
    %31 = vector.broadcast %cst_11 : f32 to vector<1x128xf32>
    %32 = arith.mulf %24, %31 : vector<1x128xf32>
    %cst_12 = arith.constant 9.99999974E-5 : f32
    %33 = vector.broadcast %cst_12 : f32 to vector<1x128xf32>
    %34 = arith.addf %32, %33 : vector<1x128xf32>
    %35 = math.sqrt %34 : vector<1x128xf32>
    %cst_13 = arith.constant 0.0666666701 : f32
    %36 = vector.broadcast %cst_13 : f32 to vector<1x128xf32>
    %37 = arith.mulf %27, %36 : vector<1x128xf32>
    %cst_14 = arith.constant 9.99999974E-5 : f32
    %38 = vector.broadcast %cst_14 : f32 to vector<1x128xf32>
    %39 = arith.addf %37, %38 : vector<1x128xf32>
    %40 = math.sqrt %39 : vector<1x128xf32>
    %cst_15 = arith.constant 1.000000e+00 : f32
    %41 = vector.broadcast %cst_15 : f32 to vector<1x128xf32>
    %42 = arith.subf %41, %35 : vector<1x128xf32>
    %cst_16 = arith.constant 0.000000e+00 : f32
    %43 = vector.broadcast %cst_16 : f32 to vector<1x128xf32>
    %44 = arith.maximumf %42, %43 : vector<1x128xf32>
    %cst_17 = arith.constant 0.000000e+00 : f32
    %45 = vector.broadcast %cst_17 : f32 to vector<1x128xf32>
    %46 = arith.select %30, %44, %45 : vector<1x128xi1>, vector<1x128xf32>
    %cst_18 = arith.constant 1.000000e+00 : f32
    %47 = vector.broadcast %cst_18 : f32 to vector<1x128xf32>
    %48 = arith.subf %47, %40 : vector<1x128xf32>
    %cst_19 = arith.constant 0.000000e+00 : f32
    %49 = vector.broadcast %cst_19 : f32 to vector<1x128xf32>
    %50 = arith.maximumf %48, %49 : vector<1x128xf32>
    %cst_20 = arith.constant 0.000000e+00 : f32
    %51 = vector.broadcast %cst_20 : f32 to vector<1x128xf32>
    %52 = arith.select %30, %50, %51 : vector<1x128xi1>, vector<1x128xf32>
    %cst_21 = arith.constant dense<0.000000e+00> : vector<1xf32>
    %53 = vector.multi_reduction <add>, %46, %cst_21 [1] : vector<1x128xf32> to vector<1xf32>
    %54 = vector.shape_cast %53 : vector<1xf32> to vector<1x1xf32>
    %cst_22 = arith.constant dense<0.000000e+00> : vector<1xf32>
    %55 = vector.multi_reduction <add>, %52, %cst_22 [1] : vector<1x128xf32> to vector<1xf32>
    %56 = vector.shape_cast %55 : vector<1xf32> to vector<1x1xf32>
    %57 = arith.addf %54, %56 : vector<1x1xf32>
    %cst_23 = arith.constant 5.000000e-01 : f32
    %58 = vector.broadcast %cst_23 : f32 to vector<1x1xf32>
    %59 = arith.mulf %58, %57 : vector<1x1xf32>
    %cst_24 = arith.constant 3.125000e-02 : f32
    %60 = vector.broadcast %cst_24 : f32 to vector<1x1xf32>
    %61 = arith.mulf %59, %60 : vector<1x1xf32>
    %cst_25 = arith.constant dense<0.000000e+00> : vector<16x16xf32>
    %62 = tpu.matmul %19, %19, %cst_25 {dimension_numbers = #tpu.dot_dimension_numbers<[1], [1], [0], [0], [0, 0, 1, 0], [], []>} : vector<16x128xf32>, vector<16x128xf32>, vector<16x16xf32> -> vector<16x16xf32>
    %cst_26 = arith.constant dense<0.000000e+00> : vector<16x16xf32>
    %63 = tpu.matmul %21, %21, %cst_26 {dimension_numbers = #tpu.dot_dimension_numbers<[1], [1], [0], [0], [0, 0, 1, 0], [], []>} : vector<16x128xf32>, vector<16x128xf32>, vector<16x16xf32> -> vector<16x16xf32>
    %64 = arith.mulf %62, %62 : vector<16x16xf32>
    %cst_27 = arith.constant dense<0.000000e+00> : vector<16xf32>
    %65 = vector.multi_reduction <add>, %64, %cst_27 [1] : vector<16x16xf32> to vector<16xf32>
    %66 = vector.shape_cast %65 : vector<16xf32> to vector<16x1xf32>
    %cst_28 = arith.constant dense<0.000000e+00> : vector<1xf32>
    %67 = vector.multi_reduction <add>, %66, %cst_28 [0] : vector<16x1xf32> to vector<1xf32>
    %68 = vector.shape_cast %67 : vector<1xf32> to vector<1x1xf32>
    %69 = arith.mulf %24, %24 : vector<1x128xf32>
    %cst_29 = arith.constant dense<0.000000e+00> : vector<1xf32>
    %70 = vector.multi_reduction <add>, %69, %cst_29 [1] : vector<1x128xf32> to vector<1xf32>
    %71 = vector.shape_cast %70 : vector<1xf32> to vector<1x1xf32>
    %72 = arith.subf %68, %71 : vector<1x1xf32>
    %cst_30 = arith.constant 0.000000e+00 : f32
    %73 = vector.broadcast %cst_30 : f32 to vector<1x1xf32>
    %74 = arith.maximumf %72, %73 : vector<1x1xf32>
    %75 = arith.mulf %63, %63 : vector<16x16xf32>
    %cst_31 = arith.constant dense<0.000000e+00> : vector<16xf32>
    %76 = vector.multi_reduction <add>, %75, %cst_31 [1] : vector<16x16xf32> to vector<16xf32>
    %77 = vector.shape_cast %76 : vector<16xf32> to vector<16x1xf32>
    %cst_32 = arith.constant dense<0.000000e+00> : vector<1xf32>
    %78 = vector.multi_reduction <add>, %77, %cst_32 [0] : vector<16x1xf32> to vector<1xf32>
    %79 = vector.shape_cast %78 : vector<1xf32> to vector<1x1xf32>
    %80 = arith.mulf %27, %27 : vector<1x128xf32>
    %cst_33 = arith.constant dense<0.000000e+00> : vector<1xf32>
    %81 = vector.multi_reduction <add>, %80, %cst_33 [1] : vector<1x128xf32> to vector<1xf32>
    %82 = vector.shape_cast %81 : vector<1xf32> to vector<1x1xf32>
    %83 = arith.subf %79, %82 : vector<1x1xf32>
    %cst_34 = arith.constant 0.000000e+00 : f32
    %84 = vector.broadcast %cst_34 : f32 to vector<1x1xf32>
    %85 = arith.maximumf %83, %84 : vector<1x1xf32>
    %86 = arith.addf %74, %85 : vector<1x1xf32>
    %cst_35 = arith.constant 1.38888892E-4 : f32
    %87 = vector.broadcast %cst_35 : f32 to vector<1x1xf32>
    %88 = arith.mulf %86, %87 : vector<1x1xf32>
    %cst_36 = arith.constant 2.500000e+01 : f32
    %89 = vector.broadcast %cst_36 : f32 to vector<1x1xf32>
    %90 = arith.mulf %89, %9 : vector<1x1xf32>
    %cst_37 = arith.constant 2.500000e+01 : f32
    %91 = vector.broadcast %cst_37 : f32 to vector<1x1xf32>
    %92 = arith.mulf %91, %61 : vector<1x1xf32>
    %93 = arith.addf %90, %92 : vector<1x1xf32>
    %cst_38 = arith.constant 1.000000e+00 : f32
    %94 = vector.broadcast %cst_38 : f32 to vector<1x1xf32>
    %95 = arith.mulf %94, %88 : vector<1x1xf32>
    %96 = arith.addf %93, %95 : vector<1x1xf32>
    %97 = arith.cmpf one, %96, %96 : vector<1x1xf32>
    %cst_39 = arith.constant 0.000000e+00 : f32
    %98 = vector.broadcast %cst_39 : f32 to vector<1x1xf32>
    %99 = arith.select %97, %98, %96 : vector<1x1xi1>, vector<1x1xf32>
    %cst_40 = arith.constant 0.000000e+00 : f32
    %cst_41 = arith.constant 3.40282347E+38 : f32
    %100 = arith.subf %cst_40, %cst_41 : f32
    %cst_42 = arith.constant 3.40282347E+38 : f32
    %101 = vector.broadcast %100 : f32 to vector<1x1xf32>
    %102 = arith.maximumf %101, %99 : vector<1x1xf32>
    %103 = vector.broadcast %cst_42 : f32 to vector<1x1xf32>
    %104 = arith.minimumf %103, %102 : vector<1x1xf32>
    %c0_43 = arith.constant 0 : index
    %c0_44 = arith.constant 0 : index
    %105 = vector.load %arg2[%c0_43, %c0_44] : memref<1x1xf32, #tpu.memory_space<vmem>>, vector<1x1xf32>
    tpu.vector_store %arg2[%c0_43, %c0_44], %104 {strides = array<i32>} : memref<1x1xf32, #tpu.memory_space<vmem>>, vector<1x1xf32>,
    return
  }
}

</mosaic_0001>

<bundles_post_ra>
// kernel: tpu_custom_call.1
= control target key start
LH: loop header
LB: loop body
LE: loop exit
PB: predicated region body
PF: predicated region fallthrough
CT: control target
= control target key end

     0   :  { %7 = vsyncpa [#allocation3], 0  ;;  %s543_s0 = inlined_call_operand.hbm [shape: f32[16,128], index: 0, kind: input, shape index: {}]   ;;  %s544_s1 = inlined_call_operand.hbm [shape: f32[16,128], index: 1, kind: input, shape index: {}]   ;;  %s545_s2 = inlined_call_operand.hbm [shape: f32[1,1], index: 2, kind: output, shape index: {}]  }
   0x1   :  { %8 = vsyncpa [#allocation6], 0 }
   0x2   :  { %9 = vsyncpa [#allocation4], 0  ;;  %s463_s9 = smov [#allocation2]   ;;  %s391_s13 = scalar_lea.hbm %s543_s0, 256 }
   0x3   :  { %s15_s10 = sshll.u32 %s463_s9, 4  ;;  %p392_p0 = scmp.ne.s32.totalorder %s543_s0, %s391_s13  ;;  %s16_s10 = int_to_ptr.vmem [resolvable:$true] %s15_s10 }
   0x4   :  { %p395_p1 = scmp.lt.u32.totalorder %s391_s13, %s543_s0 }
   0x6   :  { %p397_p2 = pnand %p395_p1, %p392_p0 }
   0x8   :  { %400 = shalt.err (!%p397_p2)
}
   0x9   :  { %s401_s18 = scalar_lea.vmem %s16_s10, 256  ;;  %p406_p4 = scmp.lt.s32.totalorder %s16_s10, %s16_s10 }
   0xa   :  { %p402_p3 = scmp.ne.s32.totalorder %s16_s10, %s401_s18  ;;  %p407_p5 = scmp.lt.s32.totalorder %s401_s18, %s401_s18 }
   0xc   :  { %p408_p6 = por %p407_p5, %p406_p4 }
   0xe   :  { %p409_p7 = pnand %p408_p6, %p402_p3 }
  0x10   :  { %412 = shalt.err (!%p409_p7)
}
  0x11   :  { %s464_s19 = smov 128   ;;  %s465_s20 = smov 8  }
  0x12   :  { %21 = dma.hbm_to_vmem [thread:$0]  %s543_s0, 256, %s16_s10, [#allocation3], %s464_s19, %s464_s19, %s465_s20  }
  0x13   :  { %s466_s23 = smov [#allocation5]   ;;  %s413_s27 = scalar_lea.hbm %s544_s1, 256 }
  0x14   :  { %s27_s24 = sshll.u32 %s466_s23, 4  ;;  %p414_p8 = scmp.ne.s32.totalorder %s544_s1, %s413_s27  ;;  %s28_s24 = int_to_ptr.vmem [resolvable:$true] %s27_s24 }
  0x15   :  { %p417_p9 = scmp.lt.u32.totalorder %s413_s27, %s544_s1 }
  0x17   :  { %p419_p10 = pnand %p417_p9, %p414_p8 }
  0x19   :  { %422 = shalt.err (!%p419_p10)
}
  0x1a   :  { %s423_s4 = scalar_lea.vmem %s28_s24, 256  ;;  %p428_p12 = scmp.lt.s32.totalorder %s28_s24, %s28_s24 }
  0x1b   :  { %p424_p11 = scmp.ne.s32.totalorder %s28_s24, %s423_s4  ;;  %p429_p13 = scmp.lt.s32.totalorder %s423_s4, %s423_s4 }
  0x1d   :  { %p430_p0 = por %p429_p13, %p428_p12 }
  0x1f   :  { %p431_p1 = pnand %p430_p0, %p424_p11 }
  0x21   :  { %434 = shalt.err (!%p431_p1)
}
  0x22   :  { %33 = dma.hbm_to_vmem [thread:$0]  %s544_s1, 256, %s28_s24, [#allocation6], %s464_s19, %s464_s19, %s465_s20  }
  0x23   :  { %457 = dma.done.wait [#allocation3], 256  }
  0x24   :  { %458 = vsyncadd [#allocation3], 4294967040 }
  0x25   :  { %459 = dma.done.wait [#allocation6], 256  }
  0x26   :  { %460 = vsyncadd [#allocation6], 4294967040  ;;  %v507_v0 = vld [vmem:[#allocation2] sm:$0xff]  ;;  %v509_v1 = vld [vmem:[#allocation2 + $0x8] sm:$0xff]  ;;  %vm284_vm3 = vcmask 130048   ;;  %v98_v62 = vlaneseq  ;;  %s467_s1 = smov [#allocation7]  }
  0x27   :  { %v511_v2 = vld [vmem:[#allocation5] sm:$0xff]  ;;  %v60_v3 = vadd.f32 %v509_v1, %v507_v0  ;;  %v515_v4 = vld [vmem:[#allocation5 + $0x8] sm:$0xff]  ;;  %s341_s6 = sshll.u32 %s467_s1, 4  ;;  %vm333_vm7 = vcmask 0   ;;  %s342_s6 = int_to_ptr.vmem [resolvable:$true] %s341_s6 }
  0x28   :  { %v68_v5 = vadd.f32 %v515_v4, %v511_v2  ;;  %s435_s7 = scalar_lea.vmem %s342_s6, 16  ;;  %s439_s8 = scalar_lea.vmem %s342_s6, 32 }
  0x29   :  { %v61_v6 = vrot.slane %v60_v3, 4  ;;  %p436_p2 = scmp.ne.s32.totalorder %s342_s6, %s435_s7  ;;  %p440_p3 = scmp.lt.s32.totalorder %s342_s6, %s342_s6 }
  0x2a   :  { %v69_v7 = vrot.slane %v68_v5, 4  ;;  %p441_p4 = scmp.lt.s32.totalorder %s439_s8, %s435_s7 }
  0x2b   :  { %v62_v8 = vadd.f32 %v61_v6, %v60_v3 }
  0x2c   :  { %v70_v9 = vadd.f32 %v69_v7, %v68_v5  ;;  %p442_p5 = por %p441_p4, %p440_p3 }
  0x2d   :  { %v63_v10 = vrot.slane %v62_v8, 2 }
  0x2e   :  { %v71_v11 = vrot.slane %v70_v9, 2  ;;  %p443_p6 = pnand %p442_p5, %p436_p2 }
  0x2f   :  { %v64_v12 = vadd.f32 %v63_v10, %v62_v8  ;;  %v45_v10 = vsub.f32 %v509_v1, %v515_v4 }
  0x30   :  { %v72_v13 = vadd.f32 %v71_v11, %v70_v9  ;;  %v44_v9 = vsub.f32 %v507_v0, %v511_v2 }
  0x31   :  { %v65_v14 = vrot.slane %v64_v12, 1 }
  0x32   :  { %v73_v15 = vrot.slane %v72_v13, 1 }
  0x33   :  { %v66_v16 = vadd.f32 %v65_v14, %v64_v12  ;;  %v99_v12 = vand.u32 127, %v98_v62 }
  0x34   :  { %v74_v17 = vadd.f32 %v73_v15, %v72_v13 }
  0x35   :  { %v67_v18 = vmul.f32 0.0625, %v66_v16  ;;  %v46_v16 = vmul.f32 %v44_v9, %v44_v9  ;;  %vm100_vm5 = vcmp.lt.s32.totalorder %v99_v12, 32 }
  0x36   :  { %v75_v19 = vmul.f32 0.0625, %v74_v17  ;;  %v47_v17 = vmul.f32 %v45_v10, %v45_v10 }
  0x37   :  { %v76_v20 = vsub.f32 %v507_v0, %v67_v18  ;;  %v77_v21 = vsub.f32 %v509_v1, %v67_v18 }
  0x38   :  { %v78_v22 = vsub.f32 %v511_v2, %v75_v19  ;;  %v79_v23 = vsub.f32 %v515_v4, %v75_v19 }
  0x39   :  { %v80_v24 = vmul.f32 %v76_v20, %v76_v20  ;;  %v81_v25 = vmul.f32 %v77_v21, %v77_v21  ;;  %v374_v26 = vpack.c.bf16 %v77_v21, %v76_v20  ;;  %364 = vmatprep.mubr.f32.mxu0 %v76_v20 }
  0x3a   :  { %v89_v27 = vmul.f32 %v78_v22, %v78_v22  ;;  %v90_v28 = vmul.f32 %v79_v23, %v79_v23  ;;  %v378_v29 = vpack.c.bf16 %v79_v23, %v78_v22  ;;  %371 = vmatprep.mubr.f32.mxu1 %v78_v22 }
  0x3b   :  { %v82_v30 = vadd.f32 %v81_v25, %v80_v24  ;;  %375 = vmatprep.subr.bf16.mxu0 %v374_v26 }
  0x3c   :  { %v91_v31 = vadd.f32 %v90_v28, %v89_v27  ;;  %379 = vmatprep.subr.bf16.mxu1 %v378_v29  ;;  %377 = vmatpush3.bf16.xpose.msra.mxu0 %v374_v26 }
  0x3d   :  { %381 = vmatpush3.bf16.xpose.msra.mxu1 %v378_v29  ;;  %v83_v32 = vrot.slane %v82_v30, 4 }
  0x3e   :  { %v92_v33 = vrot.slane %v91_v31, 4 }
  0x3f   :  { %v84_v34 = vadd.f32 %v83_v32, %v82_v30 }
  0x40   :  { %v93_v35 = vadd.f32 %v92_v33, %v91_v31 }
  0x41   :  { %v85_v36 = vrot.slane %v84_v34, 2 }
  0x42   :  { %v94_v37 = vrot.slane %v93_v35, 2 }
  0x43   :  { %365 = vmatmul.mubr.f32.vlgmr.msra.gmra.mrb[0].mxu0 %v77_v21  ;;  %v86_v38 = vadd.f32 %v85_v36, %v84_v34 }
  0x44   :  { %372 = vmatmul.mubr.f32.vlgmr.msra.gmra.mrb[0].mxu1 %v79_v23  ;;  %v95_v39 = vadd.f32 %v94_v37, %v93_v35 }
  0x45   :  { %v87_v40 = vrot.slane %v86_v38, 1 }
  0x46   :  { %v96_v41 = vrot.slane %v95_v39, 1 }
  0x47   :  { %v88_v42 = vadd.f32 %v87_v40, %v86_v38 }
  0x48   :  { %v97_v43 = vadd.f32 %v96_v41, %v95_v39 }
  0x49   :  { %v101_v44 = vmul.f32 0.06666667, %v88_v42  ;;  %v298_v1 = vmul.f32 %v88_v42, %v88_v42 }
  0x4a   :  { %v110_v45 = vmul.f32 0.06666667, %v97_v43  ;;  %v318_v4 = vmul.f32 %v97_v43, %v97_v43 }
  0x4b   :  { %v102_v46 = vadd.f32 0.0001, %v101_v44 }
  0x4c   :  { %v111_v47 = vadd.f32 0.0001, %v110_v45 }
  0x4d   :  { %387 = vrsqrt.f32 %v102_v46  ;;  %vm105_vm0 = vcmp.eq.f32.partialorder %v102_v46, inf  ;;  %v108_v52 = vand.u32 2147483648, %v102_v46  ;;  %vm107_vm2 = vcmp.eq.f32.partialorder %v102_v46, 0.0 }
  0x4e   :  { %389 = vrsqrt.f32 %v111_v47  ;;  %vm114_vm1 = vcmp.eq.f32.partialorder %v111_v47, inf  ;;  %v117_v53 = vand.u32 2147483648, %v111_v47  ;;  %vm116_vm4 = vcmp.eq.f32.partialorder %v111_v47, 0.0 }
  0x57   :  { %v388_v48 = vpop.eup %387 }
  0x58   :  { %v390_v49 = vpop.eup %389  ;;  %v104_v50 = vmul.f32 %v388_v48, %v102_v46 }
  0x59   :  { %v113_v51 = vmul.f32 %v390_v49, %v111_v47 }
  0x5a   :  { %v106_v54 = vsel %vm105_vm0, %v102_v46, %v104_v50 }
  0x5b   :  { %v115_v56 = vsel %vm114_vm1, %v111_v47, %v113_v51  ;;  %v109_v63 = vsel %vm107_vm2, %v108_v52, %v106_v54 }
  0x5c   :  { %v118_v6 = vsel %vm116_vm4, %v117_v53, %v115_v56  ;;  %v119_v11 = vsub.f32 1.0, %v109_v63 }
  0x5d   :  { %v122_v13 = vsub.f32 1.0, %v118_v6 }
  0x5e   :  { %v120_v18 = vmax.f32 %v119_v11, 0.0 }
  0x5f   :  { %v123_v19 = vmax.f32 %v122_v13, 0.0 }
  0x60   :  { %v121_v0 = vsel %vm100_vm5, %v120_v18, 0.0 }
  0x61   :  { %v124_v2 = vsel %vm100_vm5, %v123_v19, 0.0 }
 0x116   :  { %v366_v55 = vpop.f32.mrb[0].mxu0 }
 0x117   :  { %v283_v57 = vmul.f32 %v366_v55, %v366_v55  ;;  %v373_v58 = vpop.f32.mrb[0].mxu1  ;;  %v198_v59 = vpop.f32.mrb[1].mxu0 }
 0x118   :  { %v304_v60 = vmul.f32 %v373_v58, %v373_v58  ;;  %v273_v61 = vpop.f32.mrb[1].mxu1  ;;  %v282_v3 = vmul.f32 %v198_v59, %v198_v59 }
 0x119   :  { %v288_v5 = vsel %vm284_vm3, %v283_v57, 0.0  ;;  %v303_v7 = vmul.f32 %v273_v61, %v273_v61 }
 0x11a   :  { %v308_v8 = vsel %vm284_vm3, %v304_v60, 0.0  ;;  %289 = vadd.xlane.f32.xlu0 %v288_v5  ;;  %v285_v14 = vsel %vm284_vm3, %v282_v3, 0.0 }
 0x11b   :  { %309 = vadd.xlane.f32.xlu1 %v308_v8  ;;  %v305_v15 = vsel %vm284_vm3, %v303_v7, 0.0 }
 0x11e   :  { %286 = vadd.xlane.f32.xlu0 %v285_v14 }
 0x11f   :  { %306 = vadd.xlane.f32.xlu1 %v305_v15 }
 0x122   :  { %48 = vadd.xlane.f32.xlu0 %v46_v16 }
 0x123   :  { %50 = vadd.xlane.f32.xlu1 %v47_v17 }
 0x126   :  { %125 = vadd.xlane.f32.xlu0 %v121_v0 }
 0x127   :  { %127 = vadd.xlane.f32.xlu1 %v124_v2 }
 0x12a   :  { %299 = vadd.xlane.f32.xlu0 %v298_v1 }
 0x12b   :  { %319 = vadd.xlane.f32.xlu1 %v318_v4 }
 0x1a7   :  { %v290_v20 = vpop.xlane.xlu0 %289 }
 0x1a8   :  { %v310_v21 = vpop.xlane.xlu1 %309 }
 0x1ab   :  { %v287_v22 = vpop.xlane.xlu0 %286 }
 0x1ac   :  { %v307_v23 = vpop.xlane.xlu1 %306  ;;  %v291_v24 = vadd.f32 %v290_v20, %v287_v22 }
 0x1ad   :  { %v311_v25 = vadd.f32 %v310_v21, %v307_v23 }
 0x1ae   :  { %v292_v26 = vrot.slane %v291_v24, 4 }
 0x1af   :  { %v312_v27 = vrot.slane %v311_v25, 4  ;;  %v49_v28 = vpop.xlane.xlu0 %48 }
 0x1b0   :  { %v293_v29 = vadd.f32 %v292_v26, %v291_v24  ;;  %v51_v30 = vpop.xlane.xlu1 %50 }
 0x1b1   :  { %v313_v31 = vadd.f32 %v312_v27, %v311_v25  ;;  %v52_v32 = vadd.f32 %v51_v30, %v49_v28 }
 0x1b2   :  { %v294_v33 = vrot.slane %v293_v29, 2 }
 0x1b3   :  { %v314_v34 = vrot.slane %v313_v31, 2  ;;  %v53_v35 = vrot.slane %v52_v32, 4  ;;  %v126_v36 = vpop.xlane.xlu0 %125 }
 0x1b4   :  { %v128_v37 = vpop.xlane.xlu1 %127  ;;  %v295_v38 = vadd.f32 %v294_v33, %v293_v29 }
 0x1b5   :  { %v54_v39 = vadd.f32 %v53_v35, %v52_v32  ;;  %v129_v40 = vadd.f32 %v128_v37, %v126_v36  ;;  %v315_v41 = vadd.f32 %v314_v34, %v313_v31 }
 0x1b6   :  { %v296_v42 = vrot.slane %v295_v38, 1 }
 0x1b7   :  { %v55_v43 = vrot.slane %v54_v39, 2  ;;  %v316_v44 = vrot.slane %v315_v41, 1  ;;  %v300_v45 = vpop.xlane.xlu0 %299  ;;  %v130_v49 = vmul.f32 0.5, %v129_v40 }
 0x1b8   :  { %v320_v46 = vpop.xlane.xlu1 %319  ;;  %v297_v47 = vadd.f32 %v296_v42, %v295_v38 }
 0x1b9   :  { %v56_v48 = vadd.f32 %v55_v43, %v54_v39  ;;  %v317_v50 = vadd.f32 %v316_v44, %v315_v41  ;;  %v131_v56 = vmul.f32 0.03125, %v130_v49 }
 0x1ba   :  { %v301_v51 = vsub.f32 %v297_v47, %v300_v45 }
 0x1bb   :  { %v57_v52 = vrot.slane %v56_v48, 1  ;;  %v321_v53 = vsub.f32 %v317_v50, %v320_v46  ;;  %v326_v61 = vmul.f32 25.0, %v131_v56 }
 0x1bc   :  { %v302_v54 = vmax.f32 %v301_v51, 0.0 }
 0x1bd   :  { %v58_v55 = vadd.f32 %v57_v52, %v56_v48  ;;  %v322_v57 = vmax.f32 %v321_v53, 0.0 }
 0x1bf   :  { %v59_v58 = vmul.f32 0.001953125, %v58_v55  ;;  %v323_v59 = vadd.f32 %v322_v57, %v302_v54 }
 0x1c1   :  { %v325_v60 = vmul.f32 25.0, %v59_v58  ;;  %v324_v63 = vmul.f32 0.00013888889, %v323_v59 }
 0x1c3   :  { %v327_v62 = vadd.f32 %v326_v61, %v325_v60 }
 0x1c5   :  { %v328_v3 = vadd.f32 %v327_v62, %v324_v63 }
 0x1c7   :  { %vm329_vm6 = vcmp.ne.f32.partialorder %v328_v3, %v328_v3 }
 0x1c8   :  { %v330_v5 = vsel %vm329_vm6, 0.0, %v328_v3 }
 0x1c9   :  { %v351_v6 = vclamps-f32 %v330_v5, 3.4028235e+38 }
 0x1cb   :  { %334 = vst.msk [vmem:[#allocation7] sm:$0x1] %vm333_vm7, %v351_v6 }
 0x1cc   :  { %446 = shalt.err (!%p443_p6)
}
 0x1cd   :  { %s447_s11 = scalar_lea.hbm %s545_s2, 16 }
 0x1ce   :  { %p448_p7 = scmp.ne.s32.totalorder %s545_s2, %s447_s11  ;;  %p451_p8 = scmp.lt.u32.totalorder %s447_s11, %s545_s2 }
 0x1d0   :  { %p453_p9 = pnand %p451_p8, %p448_p7 }
 0x1d2   :  { %456 = shalt.err (!%p453_p9)
}
 0x1d3   :  { %344 = dma.vmem_to_hbm [thread:$0]  %s342_s6, 16, %s545_s2, [#allocation4]  }
 0x1d4   :  { %461 = dma.done.wait [#allocation4], 16  }
 0x1d5   :  { %462 = vsyncadd [#allocation4], 4294967280 }
 0x1d6   :  { %348 = vsyncpa [#allocation3], 1 }
 0x1d7   :  { %349 = vsyncpa [#allocation6], 1 }
 0x1d8   :  { %350 = vsyncpa [#allocation4], 1 }

</bundles_post_ra>
